<compile_context>
chip_gen: v7x
topology: tpu7x:2x2x1
jax: 0.10.0
libtpu: 0.0.40
codegen_flags: <defaults>
</compile_context>

<pallas_src>
import functools

import jax
import jax.numpy as jnp
from jax.experimental import pallas as pl
from jax.experimental.pallas import tpu as pltpu


# ---------------------------------------------------------------------------
# Pass 1: channel pool + 7x7 conv (2 -> 1 channels, pad 3, no bias), per batch.
#   x_ref     : (1, C, H, W)   input block
#   rband_ref : (K, H, H)      row-shift matrices   (zero halo folded in)
#   cband_ref : (2, K, W, W)   banded column matrices (conv weights + halo)
#   s_ref     : (1, H, W)      conv output for this batch element (f32)
# ---------------------------------------------------------------------------
def _pool_conv_kernel(x_ref, rband_ref, cband_ref, s_ref, *, K):
    x = x_ref[0].astype(jnp.float32)                  # (C, H, W)
    cmax = jnp.max(x, axis=0)                         # (H, W)  ChannelPool[0]
    cmean = jnp.mean(x, axis=0)                       # (H, W)  ChannelPool[1]

    H, W = cmax.shape
    acc = jnp.zeros((H, W), jnp.float32)
    for ky in range(K):
        # column (W) direction of the conv; zero padding lives in the bands
        t = (jnp.dot(cmax, cband_ref[0, ky], preferred_element_type=jnp.float32)
             + jnp.dot(cmean, cband_ref[1, ky], preferred_element_type=jnp.float32))
        # row (H) direction: shift-and-accumulate as a matmul on the MXU
        acc = acc + jnp.dot(rband_ref[ky], t, preferred_element_type=jnp.float32)
    s_ref[...] = acc[None].astype(s_ref.dtype)


# ---------------------------------------------------------------------------
# Pass 2: BN-normalize + sigmoid + scale x. Lane-dense (last dim = H*W).
#   bn_ref : (2,) SMEM  [a, b] with  bn(s) = a * s + b
#   s_ref  : (1, 1, HW)       conv map for this batch element
#   x_ref  : (1, C_blk, HW)   input block
#   o_ref  : (1, C_blk, HW)   output block
# ---------------------------------------------------------------------------
def _scale_kernel(bn_ref, s_ref, x_ref, o_ref):
    a = bn_ref[0]                                     # gamma * rsqrt(var + eps)
    b = bn_ref[1]                                     # beta  - mean * a
    gate = jax.nn.sigmoid(a * s_ref[...].astype(jnp.float32) + b)   # (1,1,HW)
    o_ref[...] = (x_ref[...].astype(jnp.float32) * gate).astype(o_ref.dtype)


# ---------------------------------------------------------------------------
# Host-side helpers
# ---------------------------------------------------------------------------
def _build_bands(w_conv, H, W):
    """Fold the 7x7 conv (incl. zero padding) into matmul operands."""
    K = int(w_conv.shape[-1])
    P = (K - 1) // 2
    w = w_conv.reshape(2, K, K).astype(jnp.float32)   # ch0 = max, ch1 = mean

    # cband[c, ky, j, x] = w[c, ky, j - x + P] if 0 <= j-x+P < K else 0
    j = jnp.arange(W)[:, None]
    xx = jnp.arange(W)[None, :]
    d = j - xx + P                                    # (W, W)
    cband = jnp.where((d >= 0) & (d < K),
                      w[:, :, jnp.clip(d, 0, K - 1)], 0.0)          # (2,K,W,W)

    # rband[ky, y, y'] = 1 iff y' == y + ky - P  (rows outside [0,H) -> zero)
    y = jnp.arange(H)
    rband = ((y[None, :, None] + jnp.arange(K)[:, None, None] - P)
             == y[None, None, :]).astype(jnp.float32)               # (K,H,H)
    return rband, cband


def _pick_c_block(C, HW, itemsize, target_bytes=2 << 20):
    """Largest C block that (a) divides C, (b) is a multiple of 8 (or == C),
    and (c) keeps the block under ~2 MiB so it fits v7x VMEM comfortably."""
    if C * HW * itemsize <= target_bytes:
        return C
    divisors = [d for d in range(8, C, 8)
                if C % d == 0 and d * HW * itemsize <= target_bytes]
    return max(divisors) if divisors else C


def spatial_gate_forward(x, w_conv, gamma, beta, *, eps=1e-5):
    """SpatialGate forward. x: (B,C,H,W); w_conv: (1,2,7,7); gamma/beta scalars."""
    B, C, H, W = x.shape
    K = int(w_conv.shape[-1])
    HW = H * W
    itemsize = jnp.dtype(x.dtype).itemsize
    gamma = jnp.asarray(gamma, jnp.float32)
    beta = jnp.asarray(beta, jnp.float32)

    rband, cband = _build_bands(w_conv, H, W)

    # ---- Pass 1: channel pool + conv (one batch element per grid step) -----
    # TODO(synk): for very large C*H*W a C-tiled running max/sum accumulator
    # pass would be needed; here per-batch (C,H,W) blocks are assumed to fit VMEM.
    flops1 = B * (2 * C * H * W + K * (4 * H * W * W + 2 * H * H * W))
    bytes1 = (B * C * H * W * itemsize + rband.size * 4 + cband.size * 4
              + B * H * W * 4)
    conv = pl.pallas_call(
        functools.partial(_pool_conv_kernel, K=K),
        out_shape=jax.ShapeDtypeStruct((B, H, W), jnp.float32),
        grid=(B,),
        in_specs=[
            pl.BlockSpec((1, C, H, W), lambda b: (b, 0, 0, 0)),
            pl.BlockSpec((K, H, H), lambda b: (0, 0, 0)),
            pl.BlockSpec((2, K, W, W), lambda b: (0, 0, 0, 0)),
        ],
        out_specs=pl.BlockSpec((1, H, W), lambda b: (b, 0, 0)),
        compiler_params=pltpu.CompilerParams(
            dimension_semantics=("parallel",),
            vmem_limit_bytes=48 * 1024 * 1024),   # leaves >=16 MiB headroom on v7x
        cost_estimate=pl.CostEstimate(flops=flops1, transcendentals=0,
                                      bytes_accessed=bytes1),
    )(x, rband, cband)

    # ---- BatchNorm2d(1), training-mode global statistics over (B, H, W) ----
    # (tiny (B,H,W) reduction between the two passes keeps tiling correct)
    mean = jnp.mean(conv)
    var = jnp.mean(jnp.square(conv - mean))           # biased variance
    a = gamma * jax.lax.rsqrt(var + eps)
    b = beta - mean * a
    bn_params = jnp.stack([a, b])                     # (2,) f32 -> SMEM

    # ---- Pass 2: normalize + sigmoid + scale, lane-dense (B, C, H*W) --------
    x3 = x.reshape(B, C, HW)
    s3 = conv.reshape(B, 1, HW)
    c_blk = _pick_c_block(C, HW, itemsize)
    flops2 = 2 * B * C * HW + 2 * B * HW
    bytes2 = 2 * B * C * HW * itemsize + B * HW * 4 + 8
    out3 = pl.pallas_call(
        _scale_kernel,
        out_shape=jax.ShapeDtypeStruct((B, C, HW), x.dtype),
        grid=(B, C // c_blk),
        in_specs=[
            pl.BlockSpec(memory_space=pltpu.MemorySpace.SMEM),        # bn params
            pl.BlockSpec((1, 1, HW), lambda bi, ci: (bi, 0, 0)),      # conv map
            pl.BlockSpec((1, c_blk, HW), lambda bi, ci: (bi, ci, 0)), # x
        ],
        out_specs=pl.BlockSpec((1, c_blk, HW), lambda bi, ci: (bi, ci, 0)),
        compiler_params=pltpu.CompilerParams(
            dimension_semantics=("parallel", "parallel"),
            vmem_limit_bytes=48 * 1024 * 1024),
        cost_estimate=pl.CostEstimate(flops=flops2, transcendentals=B * HW,
                                      bytes_accessed=bytes2),
    )(bn_params, s3, x3)
    return out3.reshape(B, C, H, W)


# ---------------------------------------------------------------------------
# Pure-JAX reference (mirrors the PyTorch module) for a sanity check.
# ---------------------------------------------------------------------------
def _reference(x, w_conv, gamma, beta, eps=1e-5):
    pooled = jnp.concatenate(
        [jnp.max(x, axis=1, keepdims=True), jnp.mean(x, axis=1, keepdims=True)],
        axis=1)
    s = jax.lax.conv_general_dilated(
        pooled.astype(jnp.float32), w_conv.astype(jnp.float32),
        window_strides=(1, 1), padding=[(3, 3), (3, 3)],
        dimension_numbers=("NCHW", "OIHW", "NCHW"))
    mean = jnp.mean(s)
    var = jnp.mean(jnp.square(s - mean))
    bn = (s - mean) * jax.lax.rsqrt(var + eps) * gamma + beta
    return (x * jax.nn.sigmoid(bn)).astype(x.dtype)


if __name__ == "__main__":
    # Small shapes: H*W = 256 keeps the lane axis dense; C=16 tiles cleanly.
    B, C, H, W = 2, 16, 16, 16
    key = jax.random.PRNGKey(0)
    k_x, k_w = jax.random.split(key)

    x = jax.random.normal(k_x, (B, C, H, W), jnp.float32)
    w_conv = 0.1 * jax.random.normal(k_w, (1, 2, 7, 7), jnp.float32)  # Conv2d(2,1,7).weight
    gamma = jnp.ones((), jnp.float32)   # BatchNorm2d(1) default affine init
    beta = jnp.zeros((), jnp.float32)

    out = jax.block_until_ready(spatial_gate_forward(x, w_conv, gamma, beta))
    assert out.shape == x.shape and out.dtype == x.dtype

    ref = jax.block_until_ready(_reference(x, w_conv, gamma, beta))
    err = float(jnp.max(jnp.abs(out - ref)))
    assert err < 5e-2, f"max abs error vs reference: {err}"
    print("KERNEL_OK")
</pallas_src>

<mosaic_0001>
module attributes {stable_mosaic.version = 11 : i64} {
  func.func @_pool_conv_kernel(%arg0: i32, %arg1: memref<1x16x16x16xf32, #tpu.memory_space<vmem>>, %arg2: memref<7x16x16xf32, #tpu.memory_space<vmem>>, %arg3: memref<2x7x16x16xf32, #tpu.memory_space<vmem>>, %arg4: memref<1x16x16xf32, #tpu.memory_space<vmem>>) attributes {dimension_semantics = [#tpu.dimension_semantics<parallel>], iteration_bounds = array<i64: 2>, scalar_prefetch = 0 : i64, scratch_operands = 0 : i64, tpu.core_type = #tpu.core_type<tc>, window_params = [{transform_indices = @transform_0, window_bounds = array<i64: 1, 16, 16, 16>}, {pipeline_mode = #tpu.pipeline_mode<synchronous>, transform_indices = @transform_1, window_bounds = array<i64: 7, 16, 16>}, {pipeline_mode = #tpu.pipeline_mode<synchronous>, transform_indices = @transform_2, window_bounds = array<i64: 2, 7, 16, 16>}, {transform_indices = @transform_3, window_bounds = array<i64: 1, 16, 16>}]} {
    %c0 = arith.constant 0 : index
    %c0_0 = arith.constant 0 : index
    %c0_1 = arith.constant 0 : index
    %c0_2 = arith.constant 0 : index
    %0 = vector.load %arg1[%c0, %c0_0, %c0_1, %c0_2] : memref<1x16x16x16xf32, #tpu.memory_space<vmem>>, vector<1x16x16x16xf32>
    %1 = vector.shape_cast %0 : vector<1x16x16x16xf32> to vector<16x16x16xf32>
    %cst = arith.constant dense<0xFF800000> : vector<16x16xf32>
    %2 = vector.multi_reduction <maximumf>, %1, %cst [0] : vector<16x16x16xf32> to vector<16x16xf32>
    %cst_3 = arith.constant dense<0.000000e+00> : vector<16x16xf32>
    %3 = vector.multi_reduction <add>, %1, %cst_3 [0] : vector<16x16x16xf32> to vector<16x16xf32>
    %cst_4 = arith.constant 1.600000e+01 : f32
    %4 = vector.broadcast %cst_4 : f32 to vector<16x16xf32>
    %5 = arith.divf %3, %4 : vector<16x16xf32>
    %cst_5 = arith.constant 0.000000e+00 : f32
    %6 = vector.broadcast %cst_5 : f32 to vector<16x16xf32>
    %c0_6 = arith.constant 0 : index
    %c0_7 = arith.constant 0 : index
    %c0_8 = arith.constant 0 : index
    %c0_9 = arith.constant 0 : index
    %7 = vector.load %arg3[%c0_6, %c0_7, %c0_8, %c0_9] : memref<2x7x16x16xf32, #tpu.memory_space<vmem>>, vector<1x1x16x16xf32>
    %8 = vector.shape_cast %7 : vector<1x1x16x16xf32> to vector<16x16xf32>
    %cst_10 = arith.constant dense<0.000000e+00> : vector<16x16xf32>
    %9 = tpu.matmul %2, %8, %cst_10 {dimension_numbers = #tpu.dot_dimension_numbers<[1], [0], [0], [1], [0, 0, 1, 1], [], []>} : vector<16x16xf32>, vector<16x16xf32>, vector<16x16xf32> -> vector<16x16xf32>
    %c1 = arith.constant 1 : index
    %c0_11 = arith.constant 0 : index
    %c0_12 = arith.constant 0 : index
    %c0_13 = arith.constant 0 : index
    %10 = vector.load %arg3[%c1, %c0_11, %c0_12, %c0_13] : memref<2x7x16x16xf32, #tpu.memory_space<vmem>>, vector<1x1x16x16xf32>
    %11 = vector.shape_cast %10 : vector<1x1x16x16xf32> to vector<16x16xf32>
    %cst_14 = arith.constant dense<0.000000e+00> : vector<16x16xf32>
    %12 = tpu.matmul %5, %11, %cst_14 {dimension_numbers = #tpu.dot_dimension_numbers<[1], [0], [0], [1], [0, 0, 1, 1], [], []>} : vector<16x16xf32>, vector<16x16xf32>, vector<16x16xf32> -> vector<16x16xf32>
    %13 = arith.addf %9, %12 : vector<16x16xf32>
    %c0_15 = arith.constant 0 : index
    %c0_16 = arith.constant 0 : index
    %c0_17 = arith.constant 0 : index
    %14 = vector.load %arg2[%c0_15, %c0_16, %c0_17] : memref<7x16x16xf32, #tpu.memory_space<vmem>>, vector<1x16x16xf32>
    %15 = vector.shape_cast %14 : vector<1x16x16xf32> to vector<16x16xf32>
    %cst_18 = arith.constant dense<0.000000e+00> : vector<16x16xf32>
    %16 = tpu.matmul %15, %13, %cst_18 {dimension_numbers = #tpu.dot_dimension_numbers<[1], [0], [0], [1], [0, 0, 1, 1], [], []>} : vector<16x16xf32>, vector<16x16xf32>, vector<16x16xf32> -> vector<16x16xf32>
    %17 = arith.addf %6, %16 : vector<16x16xf32>
    %c0_19 = arith.constant 0 : index
    %c1_20 = arith.constant 1 : index
    %c0_21 = arith.constant 0 : index
    %c0_22 = arith.constant 0 : index
    %18 = vector.load %arg3[%c0_19, %c1_20, %c0_21, %c0_22] : memref<2x7x16x16xf32, #tpu.memory_space<vmem>>, vector<1x1x16x16xf32>
    %19 = vector.shape_cast %18 : vector<1x1x16x16xf32> to vector<16x16xf32>
    %cst_23 = arith.constant dense<0.000000e+00> : vector<16x16xf32>
    %20 = tpu.matmul %2, %19, %cst_23 {dimension_numbers = #tpu.dot_dimension_numbers<[1], [0], [0], [1], [0, 0, 1, 1], [], []>} : vector<16x16xf32>, vector<16x16xf32>, vector<16x16xf32> -> vector<16x16xf32>
    %c1_24 = arith.constant 1 : index
    %c1_25 = arith.constant 1 : index
    %c0_26 = arith.constant 0 : index
    %c0_27 = arith.constant 0 : index
    %21 = vector.load %arg3[%c1_24, %c1_25, %c0_26, %c0_27] : memref<2x7x16x16xf32, #tpu.memory_space<vmem>>, vector<1x1x16x16xf32>
    %22 = vector.shape_cast %21 : vector<1x1x16x16xf32> to vector<16x16xf32>
    %cst_28 = arith.constant dense<0.000000e+00> : vector<16x16xf32>
    %23 = tpu.matmul %5, %22, %cst_28 {dimension_numbers = #tpu.dot_dimension_numbers<[1], [0], [0], [1], [0, 0, 1, 1], [], []>} : vector<16x16xf32>, vector<16x16xf32>, vector<16x16xf32> -> vector<16x16xf32>
    %24 = arith.addf %20, %23 : vector<16x16xf32>
    %c1_29 = arith.constant 1 : index
    %c0_30 = arith.constant 0 : index
    %c0_31 = arith.constant 0 : index
    %25 = vector.load %arg2[%c1_29, %c0_30, %c0_31] : memref<7x16x16xf32, #tpu.memory_space<vmem>>, vector<1x16x16xf32>
    %26 = vector.shape_cast %25 : vector<1x16x16xf32> to vector<16x16xf32>
    %cst_32 = arith.constant dense<0.000000e+00> : vector<16x16xf32>
    %27 = tpu.matmul %26, %24, %cst_32 {dimension_numbers = #tpu.dot_dimension_numbers<[1], [0], [0], [1], [0, 0, 1, 1], [], []>} : vector<16x16xf32>, vector<16x16xf32>, vector<16x16xf32> -> vector<16x16xf32>
    %28 = arith.addf %17, %27 : vector<16x16xf32>
    %c0_33 = arith.constant 0 : index
    %c2 = arith.constant 2 : index
    %c0_34 = arith.constant 0 : index
    %c0_35 = arith.constant 0 : index
    %29 = vector.load %arg3[%c0_33, %c2, %c0_34, %c0_35] : memref<2x7x16x16xf32, #tpu.memory_space<vmem>>, vector<1x1x16x16xf32>
    %30 = vector.shape_cast %29 : vector<1x1x16x16xf32> to vector<16x16xf32>
    %cst_36 = arith.constant dense<0.000000e+00> : vector<16x16xf32>
    %31 = tpu.matmul %2, %30, %cst_36 {dimension_numbers = #tpu.dot_dimension_numbers<[1], [0], [0], [1], [0, 0, 1, 1], [], []>} : vector<16x16xf32>, vector<16x16xf32>, vector<16x16xf32> -> vector<16x16xf32>
    %c1_37 = arith.constant 1 : index
    %c2_38 = arith.constant 2 : index
    %c0_39 = arith.constant 0 : index
    %c0_40 = arith.constant 0 : index
    %32 = vector.load %arg3[%c1_37, %c2_38, %c0_39, %c0_40] : memref<2x7x16x16xf32, #tpu.memory_space<vmem>>, vector<1x1x16x16xf32>
    %33 = vector.shape_cast %32 : vector<1x1x16x16xf32> to vector<16x16xf32>
    %cst_41 = arith.constant dense<0.000000e+00> : vector<16x16xf32>
    %34 = tpu.matmul %5, %33, %cst_41 {dimension_numbers = #tpu.dot_dimension_numbers<[1], [0], [0], [1], [0, 0, 1, 1], [], []>} : vector<16x16xf32>, vector<16x16xf32>, vector<16x16xf32> -> vector<16x16xf32>
    %35 = arith.addf %31, %34 : vector<16x16xf32>
    %c2_42 = arith.constant 2 : index
    %c0_43 = arith.constant 0 : index
    %c0_44 = arith.constant 0 : index
    %36 = vector.load %arg2[%c2_42, %c0_43, %c0_44] : memref<7x16x16xf32, #tpu.memory_space<vmem>>, vector<1x16x16xf32>
    %37 = vector.shape_cast %36 : vector<1x16x16xf32> to vector<16x16xf32>
    %cst_45 = arith.constant dense<0.000000e+00> : vector<16x16xf32>
    %38 = tpu.matmul %37, %35, %cst_45 {dimension_numbers = #tpu.dot_dimension_numbers<[1], [0], [0], [1], [0, 0, 1, 1], [], []>} : vector<16x16xf32>, vector<16x16xf32>, vector<16x16xf32> -> vector<16x16xf32>
    %39 = arith.addf %28, %38 : vector<16x16xf32>
    %c0_46 = arith.constant 0 : index
    %c3 = arith.constant 3 : index
    %c0_47 = arith.constant 0 : index
    %c0_48 = arith.constant 0 : index
    %40 = vector.load %arg3[%c0_46, %c3, %c0_47, %c0_48] : memref<2x7x16x16xf32, #tpu.memory_space<vmem>>, vector<1x1x16x16xf32>
    %41 = vector.shape_cast %40 : vector<1x1x16x16xf32> to vector<16x16xf32>
    %cst_49 = arith.constant dense<0.000000e+00> : vector<16x16xf32>
    %42 = tpu.matmul %2, %41, %cst_49 {dimension_numbers = #tpu.dot_dimension_numbers<[1], [0], [0], [1], [0, 0, 1, 1], [], []>} : vector<16x16xf32>, vector<16x16xf32>, vector<16x16xf32> -> vector<16x16xf32>
    %c1_50 = arith.constant 1 : index
    %c3_51 = arith.constant 3 : index
    %c0_52 = arith.constant 0 : index
    %c0_53 = arith.constant 0 : index
    %43 = vector.load %arg3[%c1_50, %c3_51, %c0_52, %c0_53] : memref<2x7x16x16xf32, #tpu.memory_space<vmem>>, vector<1x1x16x16xf32>
    %44 = vector.shape_cast %43 : vector<1x1x16x16xf32> to vector<16x16xf32>
    %cst_54 = arith.constant dense<0.000000e+00> : vector<16x16xf32>
    %45 = tpu.matmul %5, %44, %cst_54 {dimension_numbers = #tpu.dot_dimension_numbers<[1], [0], [0], [1], [0, 0, 1, 1], [], []>} : vector<16x16xf32>, vector<16x16xf32>, vector<16x16xf32> -> vector<16x16xf32>
    %46 = arith.addf %42, %45 : vector<16x16xf32>
    %c3_55 = arith.constant 3 : index
    %c0_56 = arith.constant 0 : index
    %c0_57 = arith.constant 0 : index
    %47 = vector.load %arg2[%c3_55, %c0_56, %c0_57] : memref<7x16x16xf32, #tpu.memory_space<vmem>>, vector<1x16x16xf32>
    %48 = vector.shape_cast %47 : vector<1x16x16xf32> to vector<16x16xf32>
    %cst_58 = arith.constant dense<0.000000e+00> : vector<16x16xf32>
    %49 = tpu.matmul %48, %46, %cst_58 {dimension_numbers = #tpu.dot_dimension_numbers<[1], [0], [0], [1], [0, 0, 1, 1], [], []>} : vector<16x16xf32>, vector<16x16xf32>, vector<16x16xf32> -> vector<16x16xf32>
    %50 = arith.addf %39, %49 : vector<16x16xf32>
    %c0_59 = arith.constant 0 : index
    %c4 = arith.constant 4 : index
    %c0_60 = arith.constant 0 : index
    %c0_61 = arith.constant 0 : index
    %51 = vector.load %arg3[%c0_59, %c4, %c0_60, %c0_61] : memref<2x7x16x16xf32, #tpu.memory_space<vmem>>, vector<1x1x16x16xf32>
    %52 = vector.shape_cast %51 : vector<1x1x16x16xf32> to vector<16x16xf32>
    %cst_62 = arith.constant dense<0.000000e+00> : vector<16x16xf32>
    %53 = tpu.matmul %2, %52, %cst_62 {dimension_numbers = #tpu.dot_dimension_numbers<[1], [0], [0], [1], [0, 0, 1, 1], [], []>} : vector<16x16xf32>, vector<16x16xf32>, vector<16x16xf32> -> vector<16x16xf32>
    %c1_63 = arith.constant 1 : index
    %c4_64 = arith.constant 4 : index
    %c0_65 = arith.constant 0 : index
    %c0_66 = arith.constant 0 : index
    %54 = vector.load %arg3[%c1_63, %c4_64, %c0_65, %c0_66] : memref<2x7x16x16xf32, #tpu.memory_space<vmem>>, vector<1x1x16x16xf32>
    %55 = vector.shape_cast %54 : vector<1x1x16x16xf32> to vector<16x16xf32>
    %cst_67 = arith.constant dense<0.000000e+00> : vector<16x16xf32>
    %56 = tpu.matmul %5, %55, %cst_67 {dimension_numbers = #tpu.dot_dimension_numbers<[1], [0], [0], [1], [0, 0, 1, 1], [], []>} : vector<16x16xf32>, vector<16x16xf32>, vector<16x16xf32> -> vector<16x16xf32>
    %57 = arith.addf %53, %56 : vector<16x16xf32>
    %c4_68 = arith.constant 4 : index
    %c0_69 = arith.constant 0 : index
    %c0_70 = arith.constant 0 : index
    %58 = vector.load %arg2[%c4_68, %c0_69, %c0_70] : memref<7x16x16xf32, #tpu.memory_space<vmem>>, vector<1x16x16xf32>
    %59 = vector.shape_cast %58 : vector<1x16x16xf32> to vector<16x16xf32>
    %cst_71 = arith.constant dense<0.000000e+00> : vector<16x16xf32>
    %60 = tpu.matmul %59, %57, %cst_71 {dimension_numbers = #tpu.dot_dimension_numbers<[1], [0], [0], [1], [0, 0, 1, 1], [], []>} : vector<16x16xf32>, vector<16x16xf32>, vector<16x16xf32> -> vector<16x16xf32>
    %61 = arith.addf %50, %60 : vector<16x16xf32>
    %c0_72 = arith.constant 0 : index
    %c5 = arith.constant 5 : index
    %c0_73 = arith.constant 0 : index
    %c0_74 = arith.constant 0 : index
    %62 = vector.load %arg3[%c0_72, %c5, %c0_73, %c0_74] : memref<2x7x16x16xf32, #tpu.memory_space<vmem>>, vector<1x1x16x16xf32>
    %63 = vector.shape_cast %62 : vector<1x1x16x16xf32> to vector<16x16xf32>
    %cst_75 = arith.constant dense<0.000000e+00> : vector<16x16xf32>
    %64 = tpu.matmul %2, %63, %cst_75 {dimension_numbers = #tpu.dot_dimension_numbers<[1], [0], [0], [1], [0, 0, 1, 1], [], []>} : vector<16x16xf32>, vector<16x16xf32>, vector<16x16xf32> -> vector<16x16xf32>
    %c1_76 = arith.constant 1 : index
    %c5_77 = arith.constant 5 : index
    %c0_78 = arith.constant 0 : index
    %c0_79 = arith.constant 0 : index
    %65 = vector.load %arg3[%c1_76, %c5_77, %c0_78, %c0_79] : memref<2x7x16x16xf32, #tpu.memory_space<vmem>>, vector<1x1x16x16xf32>
    %66 = vector.shape_cast %65 : vector<1x1x16x16xf32> to vector<16x16xf32>
    %cst_80 = arith.constant dense<0.000000e+00> : vector<16x16xf32>
    %67 = tpu.matmul %5, %66, %cst_80 {dimension_numbers = #tpu.dot_dimension_numbers<[1], [0], [0], [1], [0, 0, 1, 1], [], []>} : vector<16x16xf32>, vector<16x16xf32>, vector<16x16xf32> -> vector<16x16xf32>
    %68 = arith.addf %64, %67 : vector<16x16xf32>
    %c5_81 = arith.constant 5 : index
    %c0_82 = arith.constant 0 : index
    %c0_83 = arith.constant 0 : index
    %69 = vector.load %arg2[%c5_81, %c0_82, %c0_83] : memref<7x16x16xf32, #tpu.memory_space<vmem>>, vector<1x16x16xf32>
    %70 = vector.shape_cast %69 : vector<1x16x16xf32> to vector<16x16xf32>
    %cst_84 = arith.constant dense<0.000000e+00> : vector<16x16xf32>
    %71 = tpu.matmul %70, %68, %cst_84 {dimension_numbers = #tpu.dot_dimension_numbers<[1], [0], [0], [1], [0, 0, 1, 1], [], []>} : vector<16x16xf32>, vector<16x16xf32>, vector<16x16xf32> -> vector<16x16xf32>
    %72 = arith.addf %61, %71 : vector<16x16xf32>
    %c0_85 = arith.constant 0 : index
    %c6 = arith.constant 6 : index
    %c0_86 = arith.constant 0 : index
    %c0_87 = arith.constant 0 : index
    %73 = vector.load %arg3[%c0_85, %c6, %c0_86, %c0_87] : memref<2x7x16x16xf32, #tpu.memory_space<vmem>>, vector<1x1x16x16xf32>
    %74 = vector.shape_cast %73 : vector<1x1x16x16xf32> to vector<16x16xf32>
    %cst_88 = arith.constant dense<0.000000e+00> : vector<16x16xf32>
    %75 = tpu.matmul %2, %74, %cst_88 {dimension_numbers = #tpu.dot_dimension_numbers<[1], [0], [0], [1], [0, 0, 1, 1], [], []>} : vector<16x16xf32>, vector<16x16xf32>, vector<16x16xf32> -> vector<16x16xf32>
    %c1_89 = arith.constant 1 : index
    %c6_90 = arith.constant 6 : index
    %c0_91 = arith.constant 0 : index
    %c0_92 = arith.constant 0 : index
    %76 = vector.load %arg3[%c1_89, %c6_90, %c0_91, %c0_92] : memref<2x7x16x16xf32, #tpu.memory_space<vmem>>, vector<1x1x16x16xf32>
    %77 = vector.shape_cast %76 : vector<1x1x16x16xf32> to vector<16x16xf32>
    %cst_93 = arith.constant dense<0.000000e+00> : vector<16x16xf32>
    %78 = tpu.matmul %5, %77, %cst_93 {dimension_numbers = #tpu.dot_dimension_numbers<[1], [0], [0], [1], [0, 0, 1, 1], [], []>} : vector<16x16xf32>, vector<16x16xf32>, vector<16x16xf32> -> vector<16x16xf32>
    %79 = arith.addf %75, %78 : vector<16x16xf32>
    %c6_94 = arith.constant 6 : index
    %c0_95 = arith.constant 0 : index
    %c0_96 = arith.constant 0 : index
    %80 = vector.load %arg2[%c6_94, %c0_95, %c0_96] : memref<7x16x16xf32, #tpu.memory_space<vmem>>, vector<1x16x16xf32>
    %81 = vector.shape_cast %80 : vector<1x16x16xf32> to vector<16x16xf32>
    %cst_97 = arith.constant dense<0.000000e+00> : vector<16x16xf32>
    %82 = tpu.matmul %81, %79, %cst_97 {dimension_numbers = #tpu.dot_dimension_numbers<[1], [0], [0], [1], [0, 0, 1, 1], [], []>} : vector<16x16xf32>, vector<16x16xf32>, vector<16x16xf32> -> vector<16x16xf32>
    %83 = arith.addf %72, %82 : vector<16x16xf32>
    %84 = vector.shape_cast %83 : vector<16x16xf32> to vector<1x16x16xf32>
    %c0_98 = arith.constant 0 : index
    %c0_99 = arith.constant 0 : index
    %c0_100 = arith.constant 0 : index
    %85 = vector.load %arg4[%c0_98, %c0_99, %c0_100] : memref<1x16x16xf32, #tpu.memory_space<vmem>>, vector<1x16x16xf32>
    tpu.vector_store %arg4[%c0_98, %c0_99, %c0_100], %84 {strides = array<i32>} : memref<1x16x16xf32, #tpu.memory_space<vmem>>, vector<1x16x16xf32>,
    return
  }
  func.func @transform_0(%arg0: i32) -> (i32, i32, i32, i32) {
    %c0_i32 = arith.constant 0 : i32
    %c0_i32_0 = arith.constant 0 : i32
    %c0_i32_1 = arith.constant 0 : i32
    %c0_i32_2 = arith.constant 0 : i32
    return %arg0, %c0_i32, %c0_i32_0, %c0_i32_1 : i32, i32, i32, i32
  }
  func.func @transform_1(%arg0: i32) -> (i32, i32, i32) {
    %c0_i32 = arith.constant 0 : i32
    %c0_i32_0 = arith.constant 0 : i32
    %c0_i32_1 = arith.constant 0 : i32
    %c0_i32_2 = arith.constant 0 : i32
    return %c0_i32, %c0_i32_0, %c0_i32_1 : i32, i32, i32
  }
  func.func @transform_2(%arg0: i32) -> (i32, i32, i32, i32) {
    %c0_i32 = arith.constant 0 : i32
    %c0_i32_0 = arith.constant 0 : i32
    %c0_i32_1 = arith.constant 0 : i32
    %c0_i32_2 = arith.constant 0 : i32
    %c0_i32_3 = arith.constant 0 : i32
    return %c0_i32, %c0_i32_0, %c0_i32_1, %c0_i32_2 : i32, i32, i32, i32
  }
  func.func @transform_3(%arg0: i32) -> (i32, i32, i32) {
    %c0_i32 = arith.constant 0 : i32
    %c0_i32_0 = arith.constant 0 : i32
    %c0_i32_1 = arith.constant 0 : i32
    return %arg0, %c0_i32, %c0_i32_0 : i32, i32, i32
  }
}

</mosaic_0001>

<bundles_post_ra>
// kernel: tpu_custom_call.1
= control target key start
LH: loop header
LB: loop body
LE: loop exit
PB: predicated region body
PF: predicated region fallthrough
CT: control target
= control target key end

     0   :  { %8 = vsyncpa [#allocation3], 0  ;;  %s3387_s0 = inlined_call_operand.hbm [shape: f32[2,16,16,16], index: 0, kind: input, shape index: {}]   ;;  %s3388_s1 = inlined_call_operand.hbm [shape: f32[7,16,16], index: 1, kind: input, shape index: {}]   ;;  %s3389_s2 = inlined_call_operand.hbm [shape: f32[2,7,16,16], index: 2, kind: input, shape index: {}]   ;;  %s3390_s3 = inlined_call_operand.hbm [shape: f32[2,16,16], index: 3, kind: output, shape index: {}]  }
   0x1   :  { %10 = vsyncpa [#allocation3 + $0x1], 0 }
   0x2   :  { %11 = vsyncpa [#allocation6], 0 }
   0x3   :  { %12 = vsyncpa [#allocation4], 0 }
   0x4   :  { %14 = vsyncpa [#allocation4 + $0x1], 0  ;;  %s2846_s12 = smov 0   ;;  %s2848_s13 = smov 0  }
   0x5   :  { %s2850_s14 = smov 0   ;;  %s2852_s15 = smov 0  }
   0x6 LB: > { %s2867_s16 = sadd.s32 4294967295, %s2816_s15   ;;  %s2186_s17 = sadd.s32 4294967294, %s2816_s15   ;;  %s2816_s15 = sphi %s2852_s15, %s3410_s15   ;;  %s2812_s14 = sphi %s2850_s14, %s3409_s14   ;;  %s2808_s13 = sphi %s2848_s13, %s3408_s13   ;;  %s2804_s12 = sphi %s2846_s12, %s3407_s12  }
   0x7   : > { %p40_p0 = scmp.ne.s32.totalorder %s2808_s13, %s2804_s12  ;;  %p3391_p1 = scmp.eq.s32.totalorder %s2867_s16, 0 }
   0x8   : > { %p112_p3 = scmp.eq.s32.totalorder %s2186_s17, 1  ;;  %p2187_p5 = scmp.ge.s32.totalorder %s2816_s15, 1 }
   0x9   : > { %p2876_p4 = por %p3391_p1, %p40_p0  ;;  %p119_p7 = scmp.lt.s32.totalorder %s2816_s15, 3 }
   0xa   : > { %p2881_p6 = por %p112_p3, %p40_p0  ;;  %s2818_s21 = smov [#allocation5]  }
   0xb   : > { %s3394_s18 = scalar_select %p2876_p4, 1, 0 }
   0xc   : > { %s3395_s19 = scalar_select %p2881_p6, 1, 0 }
   0xd   : > { %p2886_p8 = pnand %p2187_p5, %p119_p7  ;;  %s131_s22 = sshll.u32 %s2818_s21, 4  ;;  %s2890_s22 = int_to_ptr.vmem [resolvable:$true] %s131_s22 }
   0xe   : > { %s2819_s24 = smov [#allocation7]   ;;  %s2660_s28 = scalar_lea.hbm %s3388_s1, 1792 }
   0xf   : > { %p2601_p9 = pneg %p2886_p8  ;;  %s144_s25 = sshll.u32 %s2819_s24, 4  ;;  %s2901_s25 = int_to_ptr.vmem [resolvable:$true] %s144_s25 }
  0x10   : > { %p2661_p12 = scmp.ne.s32.totalorder %s3388_s1, %s2660_s28  ;;  %p2667_p5 = scmp.lt.u32.totalorder %s2660_s28, %s3388_s1 }
  0x11   : > { %p2897_p11 = pnand %p2601_p9, %p3391_p1 }
  0x13   : > { %p2662_p13 = pneg %p2897_p11 }
  0x15   : > { %p2663_p0 = pnand %p2662_p13, %p2661_p12 }
  0x17   : > { %p2664_p3 = pneg %p2663_p0 }
  0x19   : > { %p2669_p7 = pnand %p2667_p5, %p2664_p3 }
  0x1b   : > { %2672 = shalt.err (!%p2669_p7)
}
  0x1c   : > { %s2673_s6 = scalar_lea.vmem %s2890_s22, 1792  ;;  %p2681_p2 = scmp.lt.s32.totalorder %s2890_s22, %s2890_s22 }
  0x1d   : > { %p2674_p9 = scmp.ne.s32.totalorder %s2890_s22, %s2673_s6  ;;  %p2682_p12 = scmp.lt.s32.totalorder %s2673_s6, %s2673_s6 }
  0x1f   : > { %p2676_p10 = pnand %p2674_p9, %p2662_p13  ;;  %p2683_p0 = por %p2682_p12, %p2681_p2 }
  0x21   : > { %p2677_p1 = pneg %p2676_p10 }
  0x23   : > { %p2684_p6 = pnand %p2683_p0, %p2677_p1 }
  0x25   : > { %2687 = shalt.err (!%p2684_p6)
}
  0x26   : > { %s2820_s7 = smov 128   ;;  %s2821_s8 = smov 8  }
  0x27   : > { %2604 = dma.hbm_to_vmem [thread:$0]  (!%p2897_p11), %s3388_s1, 1792, %s2890_s22, [#allocation6], %s2820_s7, %s2820_s7, %s2821_s8  }
  0x28   : > { %s2688_s21 = scalar_lea.hbm %s3389_s2, 3584 }
  0x29   : > { %p2689_p1 = scmp.ne.s32.totalorder %s3389_s2, %s2688_s21  ;;  %p2695_p10 = scmp.lt.u32.totalorder %s2688_s21, %s3389_s2 }
  0x2b   : > { %p2691_p2 = pnand %p2689_p1, %p2662_p13 }
  0x2d   : > { %p2692_p6 = pneg %p2691_p2 }
  0x2f   : > { %p2697_p3 = pnand %p2695_p10, %p2692_p6 }
  0x31   : > { %2700 = shalt.err (!%p2697_p3)
}
  0x32   : > { %s2701_s22 = scalar_lea.vmem %s2901_s25, 3584  ;;  %p2709_p12 = scmp.lt.s32.totalorder %s2901_s25, %s2901_s25 }
  0x33   : > { %p2702_p5 = scmp.ne.s32.totalorder %s2901_s25, %s2701_s22  ;;  %p2710_p0 = scmp.lt.s32.totalorder %s2701_s22, %s2701_s22 }
  0x35   : > { %p2704_p7 = pnand %p2702_p5, %p2662_p13  ;;  %p2711_p1 = por %p2710_p0, %p2709_p12 }
  0x37   : > { %p2705_p9 = pneg %p2704_p7 }
  0x39   : > { %p2712_p2 = pnand %p2711_p1, %p2705_p9 }
  0x3b   : > { %2715 = shalt.err (!%p2712_p2)
}
  0x3c   : > { %2607 = dma.hbm_to_vmem [thread:$0]  (!%p2897_p11), %s3389_s2, 3584, %s2901_s25, [#allocation6], %s2820_s7, %s2820_s7, %s2821_s8  }
  0x3d   : > { %s2962_s23 = sadd.s32 1, %s2816_s15   ;;  %s27_s4 = sadd.s32 1, %s2812_s14 }
  0x3e   : > { %s24_s5 = ssub.s32 %s2816_s15, %s2962_s23  ;;  %p34_p13 = scmp.ne.s32.totalorder %s2812_s14, %s2808_s13 }
  0x3f   : > { %p25_p6 = scmp.eq.s32.totalorder %s24_s5, 0  ;;  %p35_p10 = scmp.eq.s32.totalorder %s2816_s15, 0 }
  0x40   : > { %p3398_p3 = scmp.eq.s32.totalorder %s2867_s16, 1  ;;  %p2618_p7 = scmp.lt.s32.totalorder %s2816_s15, 2 }
  0x41   : > { %s2978_s9 = scalar_select %p25_p6, %s2812_s14, %s27_s4  }
  0x42   : > { %p2972_p5 = por %p3398_p3, %p34_p13  ;;  %p36_p9 = por %p35_p10, %p34_p13 }
  0x43   : > { %s158_s10 = sand.u32 1, %s2812_s14   ;;  %s2246_s25 = sshll.u32 %s2816_s15, 12 }
  0x44   : > { %s3399_s6 = scalar_select %p2972_p5, 1, 0 }
  0x45   : > { %s2191_s11 = sshll.u32 %s158_s10, 8  ;;  %s2985_s24 = scalar_lea.hbm %s3387_s0, %s2246_s25 }
  0x46   : > { %s162_s26 = scalar_lea.vmem [#allocation2], %s2191_s11  ;;  %p2989_p11 = pnand %p2618_p7, %p36_p9 }
  0x47   : > { %s169_s27 = sshll.u32 %s162_s26, 4  ;;  %s2993_s22 = scalar_lea.sflag [#allocation3], %s158_s10  ;;  %s2987_s27 = int_to_ptr.vmem [resolvable:$true] %s169_s27 }
  0x48   : > { %s2716_s29 = scalar_lea.hbm %s2985_s24, 4096  ;;  %p2718_p0 = pneg %p2989_p11 }
  0x49   : > { %p2717_p12 = scmp.ne.s32.totalorder %s2985_s24, %s2716_s29  ;;  %s2721_s5 = scalar_lea.hbm %s3387_s0, 8192 }
  0x4a   : > { %p2722_p13 = scmp.lt.u32.totalorder %s2985_s24, %s3387_s0  ;;  %p2723_p6 = scmp.lt.u32.totalorder %s2721_s5, %s2716_s29 }
  0x4b   : > { %p2719_p1 = pnand %p2718_p0, %p2717_p12  ;;  %p2725_p3 = scmp.lt.u32.totalorder %s2716_s29, %s2985_s24 }
  0x4c   : > { %p2724_p10 = por %p2723_p6, %p2722_p13 }
  0x4d   : > { %p2720_p2 = pneg %p2719_p1 }
  0x4e   : > { %p2726_p7 = por %p2725_p3, %p2724_p10 }
  0x50   : > { %p2727_p9 = pnand %p2726_p7, %p2720_p2 }
  0x52   : > { %2730 = shalt.err (!%p2727_p9)
}
  0x53   : > { %s2731_s10 = scalar_lea.vmem %s2987_s27, 4096  ;;  %s2822_s17 = smov [#allocation2]  }
  0x54   : > { %p2732_p12 = scmp.ne.s32.totalorder %s2987_s27, %s2731_s10  ;;  %s2736_s21 = sshll.u32 %s2822_s17, 4  ;;  %s2737_s21 = int_to_ptr.vmem [resolvable:$false] %s2736_s21 }
  0x55   : > { %s2738_s26 = scalar_lea.vmem %s2737_s21, 8192  ;;  %p2739_p4 = scmp.lt.s32.totalorder %s2987_s27, %s2737_s21 }
  0x56   : > { %p2734_p1 = pnand %p2732_p12, %p2718_p0  ;;  %p2740_p13 = scmp.lt.s32.totalorder %s2738_s26, %s2731_s10 }
  0x58   : > { %p2735_p5 = pneg %p2734_p1  ;;  %p2741_p6 = por %p2740_p13, %p2739_p4 }
  0x5a   : > { %p2742_p10 = pnand %p2741_p6, %p2735_p5 }
  0x5c   : > { %2745 = shalt.err (!%p2742_p10)
}
  0x5d   : > { %2611 = dma.hbm_to_vmem [thread:$0]  (!%p2989_p11), %s2985_s24, 4096, %s2987_s27, %s2993_s22, %s2820_s7, %s2820_s7, %s2821_s8  }
  0x5e   : > { %181 = sbr.rel (%p2886_p8) target bundleno = 868 (0x364), region = 32  ;;  %s3027_s29 = sand.u32 (!%p2886_p8), 1, %s2808_s13  }
  0x5f   : > { %s2195_s30 = sshll.u32 (!%p2886_p8), %s3027_s29, 8  ;;  %s184_s4 = scalar_lea.sflag (!%p2886_p8), [#allocation3], %s3027_s29 }
  0x60   : > { %s3031_s5 = scalar_lea.vmem (!%p2886_p8), [#allocation2], %s2195_s30  ;;  %p3401_p4 = scmp.ne.s32.totalorder (!%p2886_p8), %s3394_s18, 0 }
  0x65   : > { %2791 = dma.done.wait (%p3401_p4), %s184_s4, 4096  }
  0x66   : > { %2793 = vsyncadd (%p3401_p4), %s184_s4, 4294963200  ;;  %p3402_p5 = scmp.eq.s32.totalorder %s2867_s16, 0 }
  0x68   : > { %2795 = dma.done.wait (%p3402_p5), [#allocation6], 5376   ;;  %p3403_p8 = pmov %p3402_p5 }
  0x69   : > { %vm250_vm0 = vcmask 130048   ;;  %v381_v0 = vld [vmem:[#allocation7 + $0x70] sm:$0xff]  ;;  %v382_v1 = vld [vmem:[#allocation7 + $0x78] sm:$0xff]  ;;  %v551_v2 = vld [vmem:[#allocation7 + $0x80] sm:$0xff]  ;;  %s2198_s18 = sshll.u32 %s3027_s29, 4  ;;  %s2247_s8 = sshll.u32 %s2867_s16, 8 }
  0x6a   : > { %2797 = vsyncadd (%p3403_p8), [#allocation6], 4294961920  ;;  %v2479_v3 = vpack.c.bf16 %v382_v1, %v381_v0  ;;  %v552_v4 = vld [vmem:[#allocation7 + $0x88] sm:$0xff]  ;;  %v218_v5 = vld [vmem:[%s3031_s5] sm:$0xff]  ;;  %s217_s20 = scalar_lea.vmem [#allocation8], %s2198_s18  ;;  %s3341_s28 = scalar_lea.hbm %s3390_s3, %s2247_s8 }
  0x6b   : > { %v3043_v6 = vld [vmem:[%s3031_s5 + $0x10] sm:$0xff]  ;;  %v2487_v7 = vpack.c.bf16 %v552_v4, %v551_v2  ;;  %v3046_v8 = vld [vmem:[%s3031_s5 + $0x20] sm:$0xff]  ;;  %v313_v10 = vsel %vm250_vm0, %v218_v5, 0.0  ;;  %v3085_v25 = vld [vmem:[%s3031_s5 + $0x8] sm:$0xff]  ;;  %v251_v32 = vsel %vm250_vm0, %v218_v5, -inf  ;;  %s2094_s7 = sshll.u32 %s217_s20, 4  ;;  %s3336_s7 = int_to_ptr.vmem [resolvable:$true] %s2094_s7 }
  0x6c   : > { %v3049_v9 = vld [vmem:[%s3031_s5 + $0x30] sm:$0xff]  ;;  %v314_v11 = vsel %vm250_vm0, %v3043_v6, 0.0  ;;  %2480 = vmatprep.subr.bf16.mxu0 %v2479_v3  ;;  %v3055_v12 = vld [vmem:[%s3031_s5 + $0x40] sm:$0xff]  ;;  %v316_v14 = vsel %vm250_vm0, %v3046_v8, 0.0  ;;  %v3090_v28 = vld [vmem:[%s3031_s5 + $0x18] sm:$0xff]  ;;  %v344_v31 = vsel %vm250_vm0, %v3085_v25, 0.0 }
  0x6d   : > { %v315_v13 = vadd.f32 %v314_v11, %v313_v10  ;;  %2488 = vmatprep.subr.bf16.mxu1 %v2487_v7  ;;  %2482 = vmatpush3.bf16.msra.mxu0 %v2479_v3  ;;  %v3060_v15 = vld [vmem:[%s3031_s5 + $0x50] sm:$0xff]  ;;  %v3063_v16 = vld [vmem:[%s3031_s5 + $0x60] sm:$0xff]  ;;  %v318_v17 = vsel %vm250_vm0, %v3049_v9, 0.0  ;;  %v320_v24 = vsel %vm250_vm0, %v3055_v12, 0.0  ;;  %v3093_v29 = vld [vmem:[%s3031_s5 + $0x28] sm:$0xff]  ;;  %v345_v37 = vsel %vm250_vm0, %v3090_v28, 0.0 }
  0x6e   : > { %2490 = vmatpush3.bf16.msra.mxu1 %v2487_v7  ;;  %v3068_v18 = vld [vmem:[%s3031_s5 + $0x70] sm:$0xff]  ;;  %v3071_v19 = vld [vmem:[%s3031_s5 + $0x80] sm:$0xff]  ;;  %v322_v27 = vsel %vm250_vm0, %v3060_v15, 0.0  ;;  %v3096_v30 = vld [vmem:[%s3031_s5 + $0x38] sm:$0xff]  ;;  %v324_v36 = vsel %vm250_vm0, %v3063_v16, 0.0  ;;  %v347_v38 = vsel %vm250_vm0, %v3093_v29, 0.0  ;;  %v346_v45 = vadd.f32 %v345_v37, %v344_v31 }
  0x6f   : > { %v3074_v20 = vld [vmem:[%s3031_s5 + $0x90] sm:$0xff]  ;;  %v317_v21 = vadd.f32 %v316_v14, %v315_v13  ;;  %v3077_v22 = vld [vmem:[%s3031_s5 + $0xa0] sm:$0xff]  ;;  %v326_v41 = vsel %vm250_vm0, %v3068_v18, 0.0  ;;  %v328_v42 = vsel %vm250_vm0, %v3071_v19, 0.0  ;;  %v3124_v43 = vld [vmem:[%s3031_s5 + $0x48] sm:$0xff]  ;;  %v349_v50 = vsel %vm250_vm0, %v3096_v30, 0.0 }
  0x70   : > { %v3080_v23 = vld [vmem:[%s3031_s5 + $0xb0] sm:$0xff]  ;;  %v3102_v33 = vld [vmem:[%s3031_s5 + $0xc0] sm:$0xff]  ;;  %v3127_v44 = vld [vmem:[%s3031_s5 + $0x58] sm:$0xff]  ;;  %v330_v46 = vsel %vm250_vm0, %v3074_v20, 0.0  ;;  %v332_v47 = vsel %vm250_vm0, %v3077_v22, 0.0  ;;  %v348_v54 = vadd.f32 %v347_v38, %v346_v45  ;;  %v351_v57 = vsel %vm250_vm0, %v3124_v43, 0.0 }
  0x71   : > { %v319_v26 = vadd.f32 %v318_v17, %v317_v21  ;;  %v3105_v34 = vld [vmem:[%s3031_s5 + $0xd0] sm:$0xff]  ;;  %v3108_v35 = vld [vmem:[%s3031_s5 + $0xe0] sm:$0xff]  ;;  %v3135_v48 = vsel %vm250_vm0, %v3080_v23, 0.0  ;;  %v3138_v49 = vld [vmem:[%s3031_s5 + $0x68] sm:$0xff]  ;;  %v3144_v52 = vsel %vm250_vm0, %v3102_v33, 0.0  ;;  %v353_v58 = vsel %vm250_vm0, %v3127_v44, 0.0 }
  0x72   : > { %v3117_v39 = vld [vmem:[%s3031_s5 + $0xf0] sm:$0xff]  ;;  %v3148_v53 = vsel %vm250_vm0, %v3105_v34, 0.0  ;;  %v3152_v55 = vsel %vm250_vm0, %v3108_v35, 0.0  ;;  %v379_v60 = vld [vmem:[#allocation7 + $0x8] sm:$0xff]  ;;  %v350_v62 = vadd.f32 %v349_v50, %v348_v54  ;;  %v355_v63 = vsel %vm250_vm0, %v3138_v49, 0.0  ;;  %v548_v1 = vld [vmem:[#allocation7 + $0x10] sm:$0xff] }
  0x73   : > { %v321_v40 = vadd.f32 %v320_v24, %v319_v26  ;;  %v3156_v56 = vsel %vm250_vm0, %v3117_v39, 0.0  ;;  %v378_v59 = vld [vmem:[#allocation7] sm:$0xff]  ;;  %v549_v2 = vld [vmem:[#allocation7 + $0x18] sm:$0xff]  ;;  %v233_v3 = vld [vmem:[%s3031_s5 + $0x78] sm:$0xff]  ;;  %v252_v5 = vsel %vm250_vm0, %v3043_v6, -inf  ;;  %v253_v7 = vsel %vm250_vm0, %v3046_v8, -inf }
  0x74   : > { %v3164_v0 = vpack.c.bf16 %v379_v60, %v378_v59  ;;  %v3167_v4 = vpack.c.bf16 %v549_v2, %v548_v1  ;;  %v255_v10 = vsel %vm250_vm0, %v3049_v9, -inf  ;;  %v235_v13 = vld [vmem:[%s3031_s5 + $0x88] sm:$0xff]  ;;  %v237_v14 = vld [vmem:[%s3031_s5 + $0x98] sm:$0xff]  ;;  %v352_v21 = vadd.f32 %v351_v57, %v350_v62  ;;  %s2081_s22 = scalar_lea.sflag [#allocation4], %s3027_s29  ;;  %s2746_s11 = scalar_lea.vmem %s3336_s7, 256 }
  0x75   : > { %v323_v51 = vadd.f32 %v322_v27, %v321_v40  ;;  %v3178_v17 = vld [vmem:[%s3031_s5 + $0xa8] sm:$0xff]  ;;  %v254_v24 = vmax.f32 %v251_v32, %v253_v7  ;;  %v256_v26 = vmax.f32 %v252_v5, %v255_v10  ;;  %v257_v6 = vsel %vm250_vm0, %v3055_v12, -inf  ;;  %p2747_p11 = scmp.ne.s32.totalorder %s3336_s7, %s2746_s11  ;;  %p3404_p0 = scmp.ne.s32.totalorder %s3399_s6, 0 }
  0x76   : > { %2484 = vmatprep.subr.bf16.mxu0 %v3164_v0  ;;  %2492 = vmatprep.subr.bf16.mxu1 %v3167_v4  ;;  %v259_v8 = vsel %vm250_vm0, %v3060_v15, -inf  ;;  %v261_v9 = vsel %vm250_vm0, %v3063_v16, -inf  ;;  %v263_v27 = vsel %vm250_vm0, %v3068_v18, -inf  ;;  %v3192_v37 = vld [vmem:[%s3031_s5 + $0xc8] sm:$0xff]  ;;  %v354_v32 = vadd.f32 %v353_v58, %v352_v21  ;;  %s2823_s16 = smov [#allocation8]  }
  0x77   : > { %v325_v61 = vadd.f32 %v324_v36, %v323_v51  ;;  %v241_v36 = vld [vmem:[%s3031_s5 + $0xb8] sm:$0xff]  ;;  %v258_v38 = vmax.f32 %v254_v24, %v257_v6  ;;  %v260_v40 = vmax.f32 %v256_v26, %v259_v8  ;;  %v359_v12 = vsel %vm250_vm0, %v235_v13, 0.0  ;;  %p2748_p2 = pnand %p2747_p11, %p3404_p0  ;;  %s2750_s25 = sshll.u32 %s2823_s16, 4  ;;  %s2751_s25 = int_to_ptr.vmem [resolvable:$false] %s2750_s25 }
  0x78   : > { %v361_v45 = vsel %vm250_vm0, %v237_v14, 0.0  ;;  %v363_v15 = vsel %vm250_vm0, %v3178_v17, 0.0  ;;  %v356_v50 = vadd.f32 %v355_v63, %v354_v32  ;;  %v367_v54 = vsel %vm250_vm0, %v3192_v37, 0.0  ;;  %s2752_s10 = scalar_lea.vmem %s2751_s25, 512  ;;  %p2753_p7 = scmp.lt.s32.totalorder %s3336_s7, %s2751_s25 }
  0x79   : > { %v327_v11 = vadd.f32 %v326_v41, %v325_v61  ;;  %v357_v41 = vsel %vm250_vm0, %v233_v3, 0.0  ;;  %v262_v51 = vmax.f32 %v258_v38, %v261_v9  ;;  %v264_v18 = vmax.f32 %v260_v40, %v263_v27  ;;  %p2749_p3 = pneg %p2748_p2  ;;  %p2754_p9 = scmp.lt.s32.totalorder %s2752_s10, %s2746_s11 }
  0x7a   : > { %v265_v57 = vsel %vm250_vm0, %v3071_v19, -inf  ;;  %v267_v58 = vsel %vm250_vm0, %v3074_v20, -inf  ;;  %v358_v60 = vadd.f32 %v357_v41, %v356_v50  ;;  %v269_v61 = vsel %vm250_vm0, %v3077_v22, -inf }
  0x7b   : > { %v329_v31 = vadd.f32 %v328_v42, %v327_v11  ;;  %v365_v42 = vsel %vm250_vm0, %v241_v36, 0.0  ;;  %v282_v62 = vsel %vm250_vm0, %v3085_v25, -inf  ;;  %v283_v63 = vsel %vm250_vm0, %v3090_v28, -inf  ;;  %p2755_p12 = por %p2754_p9, %p2753_p7 }
  0x7c   : > { %v284_v19 = vsel %vm250_vm0, %v3093_v29, -inf  ;;  %v286_v20 = vsel %vm250_vm0, %v3096_v30, -inf  ;;  %v360_v1 = vadd.f32 %v359_v12, %v358_v60  ;;  %v266_v22 = vmax.f32 %v262_v51, %v265_v57  ;;  %v249_v12 = vld [vmem:[%s3031_s5 + $0xf8] sm:$0xff]  ;;  %v872_v60 = vld [vmem:[#allocation7 + $0x90] sm:$0xff] }
  0x7d   : > { %v331_v16 = vadd.f32 %v330_v46, %v329_v31  ;;  %v271_v46 = vsel %vm250_vm0, %v3080_v23, -inf  ;;  %v268_v2 = vmax.f32 %v264_v18, %v267_v58  ;;  %v285_v5 = vmax.f32 %v282_v62, %v284_v19  ;;  %v247_v31 = vld [vmem:[%s3031_s5 + $0xe8] sm:$0xff]  ;;  %p2756_p1 = pnand %p2755_p12, %p2749_p3 }
  0x7e   : > { %v287_v23 = vmax.f32 %v283_v63, %v286_v20  ;;  %v288_v25 = vsel %vm250_vm0, %v3124_v43, -inf  ;;  %v290_v7 = vsel %vm250_vm0, %v3127_v44, -inf  ;;  %v362_v10 = vadd.f32 %v361_v45, %v360_v1  ;;  %v869_v1 = vld [vmem:[#allocation7 + $0x20] sm:$0xff] }
  0x7f   : > { %v333_v59 = vadd.f32 %v332_v47, %v331_v16  ;;  %v273_v29 = vsel %vm250_vm0, %v3102_v33, -inf  ;;  %v275_v30 = vsel %vm250_vm0, %v3105_v34, -inf  ;;  %v289_v11 = vmax.f32 %v285_v5, %v288_v25  ;;  %v1115_v25 = vld [vmem:[#allocation7 + $0xa8] sm:$0xff] }
  0x80   : > { %v291_v21 = vmax.f32 %v287_v23, %v290_v7  ;;  %v292_v24 = vsel %vm250_vm0, %v3138_v49, -inf  ;;  %v294_v43 = vsel %vm250_vm0, %v233_v3, -inf  ;;  %v364_v26 = vadd.f32 %v363_v15, %v362_v10  ;;  %v1114_v23 = vld [vmem:[#allocation7 + $0xa0] sm:$0xff]  ;;  %v1112_v7 = vld [vmem:[#allocation7 + $0x38] sm:$0xff] }
  0x81   : > { %v335_v47 = vadd.f32 %v3135_v48, %v333_v59  ;;  %v245_v48 = vld [vmem:[%s3031_s5 + $0xd8] sm:$0xff]  ;;  %v272_v6 = vmax.f32 %v268_v2, %v271_v46  ;;  %v293_v8 = vmax.f32 %v289_v11, %v292_v24  ;;  %v296_v9 = vsel %vm250_vm0, %v235_v13, -inf  ;;  %v704_v10 = vld [vmem:[#allocation5 + $0x10] sm:$0xff]  ;;  %v1595_v11 = vld [vmem:[#allocation7 + $0x50] sm:$0xff] }
  0x82   : > { %v295_v33 = vmax.f32 %v291_v21, %v294_v43  ;;  %v298_v34 = vsel %vm250_vm0, %v237_v14, -inf  ;;  %v366_v32 = vadd.f32 %v365_v42, %v364_v26  ;;  %v369_v49 = vsel %vm250_vm0, %v245_v48, 0.0  ;;  %v1596_v21 = vld [vmem:[#allocation7 + $0x58] sm:$0xff]  ;;  %v1840_v43 = vld [vmem:[#allocation7 + $0xd0] sm:$0xff] }
  0x83   : > { %v337_v28 = vadd.f32 %v3144_v52, %v335_v47  ;;  %v270_v52 = vmax.f32 %v266_v22, %v269_v61  ;;  %v297_v38 = vmax.f32 %v293_v8, %v296_v9  ;;  %v302_v40 = vsel %vm250_vm0, %v241_v36, -inf  ;;  %v873_v61 = vld [vmem:[#allocation7 + $0x98] sm:$0xff]  ;;  %v870_v22 = vld [vmem:[#allocation7 + $0x28] sm:$0xff] }
  0x84   : > { %v299_v3 = vmax.f32 %v295_v33, %v298_v34  ;;  %v368_v45 = vadd.f32 %v367_v54, %v366_v32  ;;  %v276_v15 = vmax.f32 %v272_v6, %v275_v30  ;;  %v371_v14 = vsel %vm250_vm0, %v247_v31, 0.0  ;;  %v1599_v30 = vld [vmem:[#allocation7 + $0xc8] sm:$0xff] }
  0x85   : > { %v339_v44 = vadd.f32 %v3148_v53, %v337_v28  ;;  %v300_v53 = vsel %vm250_vm0, %v3178_v17, -inf  ;;  %v274_v13 = vmax.f32 %v270_v52, %v273_v29  ;;  %v279_v16 = vsel %vm250_vm0, %v3117_v39, -inf  ;;  %v1598_v29 = vld [vmem:[#allocation7 + $0xc0] sm:$0xff]  ;;  %v1838_v6 = vld [vmem:[#allocation7 + $0x68] sm:$0xff] }
  0x86   : > { %v370_v51 = vadd.f32 %v369_v49, %v368_v45  ;;  %v301_v17 = vmax.f32 %v297_v38, %v300_v53  ;;  %v303_v18 = vmax.f32 %v299_v3, %v302_v40  ;;  %v373_v36 = vsel %vm250_vm0, %v249_v12, 0.0  ;;  %v1837_v52 = vld [vmem:[#allocation7 + $0x60] sm:$0xff]  ;;  %v705_v49 = vld [vmem:[#allocation5 + $0x18] sm:$0xff]  ;;  %v545_v38 = vld [vmem:[#allocation5] sm:$0xff] }
  0x87   : > { %v341_v27 = vadd.f32 %v3152_v55, %v339_v44  ;;  %v277_v55 = vsel %vm250_vm0, %v3108_v35, -inf  ;;  %v306_v42 = vsel %vm250_vm0, %v245_v48, -inf  ;;  %v280_v54 = vmax.f32 %v276_v15, %v279_v16  ;;  %v1841_v44 = vld [vmem:[#allocation7 + $0xd8] sm:$0xff]  ;;  %v1356_v15 = vld [vmem:[#allocation7 + $0xb0] sm:$0xff] }
  0x88   : > { %v372_v35 = vadd.f32 %v371_v14, %v370_v51  ;;  %v278_v39 = vmax.f32 %v274_v13, %v277_v55  ;;  %v307_v59 = vmax.f32 %v303_v18, %v306_v42  ;;  %v308_v46 = vsel %vm250_vm0, %v247_v31, -inf  ;;  %v546_v40 = vld [vmem:[#allocation5 + $0x8] sm:$0xff]  ;;  %v1267_v13 = vld [vmem:[#allocation5 + $0x30] sm:$0xff] }
  0x89   : > { %v343_v41 = vadd.f32 %v3156_v56, %v341_v27  ;;  %v304_v56 = vsel %vm250_vm0, %v3192_v37, -inf  ;;  %v310_v37 = vsel %vm250_vm0, %v249_v12, -inf  ;;  %v2503_v19 = vpack.c.bf16 %v873_v61, %v872_v60  ;;  %v1025_v12 = vld [vmem:[#allocation5 + $0x20] sm:$0xff]  ;;  %v1026_v45 = vld [vmem:[#allocation5 + $0x28] sm:$0xff]  ;;  %v1353_v18 = vld [vmem:[#allocation7 + $0x40] sm:$0xff] }
  0x8a   : > { %v374_v57 = vadd.f32 %v373_v36, %v372_v35  ;;  %v305_v58 = vmax.f32 %v301_v17, %v304_v56  ;;  %v3262_v63 = vmax.f32 %v278_v39, %v280_v54  ;;  %v311_v47 = vmax.f32 %v307_v59, %v310_v37  ;;  %v1357_v14 = vld [vmem:[#allocation7 + $0xb8] sm:$0xff]  ;;  %v1354_v36 = vld [vmem:[#allocation7 + $0x48] sm:$0xff] }
  0x8b   : > { %v3248_v50 = vmul.f32 0.0625, %v343_v41  ;;  %v2507_v5 = vpack.c.bf16 %v870_v22, %v869_v1  ;;  %v2539_v48 = vpack.c.bf16 %v1599_v30, %v1598_v29  ;;  %v2543_v24 = vpack.c.bf16 %v1596_v21, %v1595_v11  ;;  %v1268_v56 = vld [vmem:[#allocation5 + $0x38] sm:$0xff]  ;;  %v1510_v37 = vld [vmem:[#allocation5 + $0x48] sm:$0xff] }
  0x8c   : > { %v3260_v62 = vmul.f32 0.0625, %v374_v57  ;;  %v309_v20 = vmax.f32 %v305_v58, %v308_v46  ;;  %v2551_v26 = vpack.c.bf16 %v1841_v44, %v1840_v43  ;;  %v2555_v8 = vpack.c.bf16 %v1838_v6, %v1837_v52  ;;  %v1509_v57 = vld [vmem:[#allocation5 + $0x40] sm:$0xff] }
  0x8d   : > { %2336 = vmatprep.mubr.msk.f32.mxu0 %vm250_vm0, %v3248_v50  ;;  %2350 = vmatprep.mubr.msk.f32.mxu1 %vm250_vm0, %v3248_v50  ;;  %v2527_v17 = vpack.c.bf16 %v1357_v14, %v1356_v15  ;;  %v2531_v42 = vpack.c.bf16 %v1354_v36, %v1353_v18 }
  0x8e   : > { %2337 = vmatmul.mubr.msk.f32.vlgmr.msra.gmra.mrb[0].mxu0 %vm250_vm0, %v3260_v62  ;;  %2351 = vmatmul.mubr.msk.f32.vlgmr.msra.gmra.mrb[0].mxu1 %vm250_vm0, %v3260_v62  ;;  %v3274_v2 = vmax.f32 %v309_v20, %v311_v47  ;;  %v1994_v20 = vld [vmem:[#allocation5 + $0x68] sm:$0xff] }
  0x8f   : > { %2486 = vmatpush3.bf16.msra.mxu0 %v3164_v0  ;;  %2494 = vmatpush3.bf16.msra.mxu1 %v3167_v4  ;;  %v2515_v0 = vpack.c.bf16 %v1115_v25, %v1114_v23  ;;  %v1111_v4 = vld [vmem:[#allocation7 + $0x30] sm:$0xff] }
  0x90   : > { %2343 = vmatprep.mubr.msk.f32.mxu0 %vm250_vm0, %v3262_v63  ;;  %2357 = vmatprep.mubr.msk.f32.mxu1 %vm250_vm0, %v3262_v63  ;;  %v2519_v28 = vpack.c.bf16 %v1112_v7, %v1111_v4 }
  0x91   : > { %2504 = vmatprep.subr.bf16.mxu1 %v2503_v19 }
  0x96   : > { %2344 = vmatmul.mubr.msk.f32.vlgmr.msra.gmra.mrb[0].mxu0 %vm250_vm0, %v3274_v2  ;;  %2358 = vmatmul.mubr.msk.f32.vlgmr.msra.gmra.mrb[0].mxu1 %vm250_vm0, %v3274_v2 }
  0x97   : > { %2506 = vmatpush3.bf16.msra.mxu1 %v2503_v19  ;;  %2378 = vmatprep.mubr.msk.f32.mxu1 %vm250_vm0, %v3248_v50  ;;  %v1993_v19 = vld [vmem:[#allocation5 + $0x60] sm:$0xff] }
  0x98   : > { %2508 = vmatprep.subr.bf16.mxu1 %v2507_v5  ;;  %2364 = vmatprep.mubr.msk.f32.mxu0 %vm250_vm0, %v704_v10 }
  0x9a   : > { %2379 = vmatmul.mubr.msk.f32.vlgmr.msra.gmra.mrb[2].mxu1 %vm250_vm0, %v3260_v62 }
  0x9b   : > { %2510 = vmatpush3.bf16.msra.mxu1 %v2507_v5  ;;  %2385 = vmatprep.mubr.msk.f32.mxu1 %vm250_vm0, %v3262_v63 }
  0x9c   : > { %2516 = vmatprep.subr.bf16.mxu1 %v2515_v0 }
  0xa2   : > { %2386 = vmatmul.mubr.msk.f32.vlgmr.msra.gmra.mrb[2].mxu1 %vm250_vm0, %v3274_v2 }
  0xa3   : > { %2518 = vmatpush3.bf16.msra.mxu1 %v2515_v0  ;;  %2399 = vmatprep.mubr.msk.f32.mxu1 %vm250_vm0, %v3248_v50 }
  0xa4   : > { %2520 = vmatprep.subr.bf16.mxu1 %v2519_v28 }
  0xa6   : > { %2400 = vmatmul.mubr.msk.f32.vlgmr.msra.gmra.mrb[4].mxu1 %vm250_vm0, %v3260_v62 }
  0xa7   : > { %2522 = vmatpush3.bf16.msra.mxu1 %v2519_v28  ;;  %2406 = vmatprep.mubr.msk.f32.mxu1 %vm250_vm0, %v3262_v63 }
  0xa8   : > { %2540 = vmatprep.subr.bf16.mxu1 %v2539_v48 }
  0xae   : > { %2407 = vmatmul.mubr.msk.f32.vlgmr.msra.gmra.mrb[4].mxu1 %vm250_vm0, %v3274_v2 }
  0xaf   : > { %2441 = vmatprep.mubr.msk.f32.mxu1 %vm250_vm0, %v3248_v50  ;;  %2542 = vmatpush3.bf16.msra.mxu1 %v2539_v48 }
  0xb0   : > { %2544 = vmatprep.subr.bf16.mxu1 %v2543_v24 }
  0xb2   : > { %2442 = vmatmul.mubr.msk.f32.vlgmr.msra.gmra.mrb[6].mxu1 %vm250_vm0, %v3260_v62 }
  0xb3   : > { %2448 = vmatprep.mubr.msk.f32.mxu1 %vm250_vm0, %v3262_v63  ;;  %2546 = vmatpush3.bf16.msra.mxu1 %v2543_v24 }
  0xb4   : > { %2552 = vmatprep.subr.bf16.mxu1 %v2551_v26 }
  0xba   : > { %2449 = vmatmul.mubr.msk.f32.vlgmr.msra.gmra.mrb[6].mxu1 %vm250_vm0, %v3274_v2 }
  0xbb   : > { %2554 = vmatpush3.bf16.msra.mxu1 %v2551_v26  ;;  %2462 = vmatprep.mubr.msk.f32.mxu1 %vm250_vm0, %v3248_v50 }
  0xbc   : > { %2556 = vmatprep.subr.bf16.mxu1 %v2555_v8 }
  0xbe   : > { %2463 = vmatmul.mubr.msk.f32.vlgmr.msra.gmra.mrb[8].mxu1 %vm250_vm0, %v3260_v62 }
  0xbf   : > { %2469 = vmatprep.mubr.msk.f32.mxu1 %vm250_vm0, %v3262_v63  ;;  %2558 = vmatpush3.bf16.msra.mxu1 %v2555_v8 }
  0xc6   : > { %2470 = vmatmul.mubr.msk.f32.vlgmr.msra.gmra.mrb[8].mxu1 %vm250_vm0, %v3274_v2 }
 0x169   : > { %v2345_v33 = vpop.f32.mrb[0].mxu0  ;;  %v2359_v9 = vpop.f32.mrb[0].mxu1 }
 0x16a   : > { %v536_v34 = vpop.f32.mrb[1].mxu0  ;;  %v694_v27 = vpop.f32.mrb[1].mxu1 }
 0x16b   : > { %v2499_v31 = vpack.c.bf16 %v2345_v33, %v536_v34  ;;  %v2495_v32 = vpack.c.bf16 %v2359_v9, %v694_v27 }
 0x16d   : > { %2496 = vmatprep.subr.bf16.mxu0 %v2495_v32 }
 0x16e   : > { %2498 = vmatpush3.bf16.msra.mxu0 %v2495_v32 }
 0x16f   : > { %2500 = vmatprep.subr.bf16.mxu0 %v2499_v31 }
 0x171   : > { %2365 = vmatmul.mubr.msk.f32.vlgmr.msra.gmra.mrb[2].mxu0 %vm250_vm0, %v705_v49 }
 0x172   : > { %2502 = vmatpush3.bf16.msra.mxu0 %v2499_v31  ;;  %2371 = vmatprep.mubr.msk.f32.mxu0 %vm250_vm0, %v545_v38 }
 0x175   : > { %v2387_v3 = vpop.f32.mrb[2].mxu1 }
 0x176   : > { %v1015_v53 = vpop.f32.mrb[3].mxu1 }
 0x177   : > { %v2511_v41 = vpack.c.bf16 %v2387_v3, %v1015_v53 }
 0x179   : > { %2372 = vmatmul.mubr.msk.f32.vlgmr.msra.gmra.mrb[2].mxu0 %vm250_vm0, %v546_v40  ;;  %2512 = vmatprep.subr.bf16.mxu0 %v2511_v41 }
 0x17a   : > { %2514 = vmatpush3.bf16.msra.mxu0 %v2511_v41  ;;  %2392 = vmatprep.mubr.msk.f32.mxu0 %vm250_vm0, %v1025_v12 }
 0x181   : > { %2393 = vmatmul.mubr.msk.f32.vlgmr.msra.gmra.mrb[2].mxu0 %vm250_vm0, %v1026_v45  ;;  %v2408_v55 = vpop.f32.mrb[4].mxu1 }
 0x182   : > { %v1257_v16 = vpop.f32.mrb[5].mxu1  ;;  %2413 = vmatprep.mubr.msk.f32.mxu0 %vm250_vm0, %v1267_v13 }
 0x183   : > { %v2523_v51 = vpack.c.bf16 %v2408_v55, %v1257_v16 }
 0x185   : > { %2524 = vmatprep.subr.bf16.mxu0 %v2523_v51 }
 0x186   : > { %2526 = vmatpush3.bf16.msra.mxu0 %v2523_v51 }
 0x187   : > { %2528 = vmatprep.subr.bf16.mxu0 %v2527_v17 }
 0x189   : > { %2414 = vmatmul.mubr.msk.f32.vlgmr.msra.gmra.mrb[2].mxu0 %vm250_vm0, %v1268_v56 }
 0x18a   : > { %2530 = vmatpush3.bf16.msra.mxu0 %v2527_v17  ;;  %2420 = vmatprep.mubr.msk.f32.mxu0 %vm250_vm0, %v3248_v50 }
 0x18b   : > { %2532 = vmatprep.subr.bf16.mxu0 %v2531_v42 }
 0x18d   : > { %2421 = vmatmul.mubr.msk.f32.vlgmr.msra.gmra.mrb[4].mxu0 %vm250_vm0, %v3260_v62  ;;  %v2450_v35 = vpop.f32.mrb[6].mxu1  ;;  %v1751_v62 = vld [vmem:[#allocation5 + $0x50] sm:$0xff] }
 0x18e   : > { %2534 = vmatpush3.bf16.msra.mxu0 %v2531_v42  ;;  %2427 = vmatprep.mubr.msk.f32.mxu0 %vm250_vm0, %v3262_v63  ;;  %v1741_v39 = vpop.f32.mrb[7].mxu1  ;;  %v1752_v63 = vld [vmem:[#allocation5 + $0x58] sm:$0xff] }
 0x18f   : > { %v2547_v54 = vpack.c.bf16 %v2450_v35, %v1741_v39 }
 0x195   : > { %2428 = vmatmul.mubr.msk.f32.vlgmr.msra.gmra.mrb[4].mxu0 %vm250_vm0, %v3274_v2 }
 0x196   : > { %2434 = vmatprep.mubr.msk.f32.mxu0 %vm250_vm0, %v1509_v57 }
 0x199   : > { %v2471_v58 = vpop.f32.mrb[8].mxu1 }
 0x19a   : > { %v1983_v59 = vpop.f32.mrb[9].mxu1 }
 0x19b   : > { %v2559_v50 = vpack.c.bf16 %v2471_v58, %v1983_v59 }
 0x268   : > { %v2429_v60 = vpop.f32.mrb[4].mxu0 }
 0x269   : > { %v1499_v61 = vpop.f32.mrb[5].mxu0 }
 0x26a   : > { %v2535_v46 = vpack.c.bf16 %v2429_v60, %v1499_v61 }
 0x26c   : > { %2536 = vmatprep.subr.bf16.mxu0 %v2535_v46 }
 0x26d   : > { %2538 = vmatpush3.bf16.msra.mxu0 %v2535_v46 }
 0x26e   : > { %2548 = vmatprep.subr.bf16.mxu0 %v2547_v54 }
 0x270   : > { %2435 = vmatmul.mubr.msk.f32.vlgmr.msra.gmra.mrb[2].mxu0 %vm250_vm0, %v1510_v37 }
 0x271   : > { %2550 = vmatpush3.bf16.msra.mxu0 %v2547_v54  ;;  %2455 = vmatprep.mubr.msk.f32.mxu0 %vm250_vm0, %v1751_v62 }
 0x272   : > { %2560 = vmatprep.subr.bf16.mxu0 %v2559_v50 }
 0x278   : > { %2456 = vmatmul.mubr.msk.f32.vlgmr.msra.gmra.mrb[2].mxu0 %vm250_vm0, %v1752_v63 }
 0x279   : > { %2562 = vmatpush3.bf16.msra.mxu0 %v2559_v50  ;;  %2476 = vmatprep.mubr.msk.f32.mxu0 %vm250_vm0, %v1993_v19 }
 0x280   : > { %2477 = vmatmul.mubr.msk.f32.vlgmr.msra.gmra.mrb[2].mxu0 %vm250_vm0, %v1994_v20 }
 0x353   : > { %v2478_v47 = vpop.f32.mrb[2].mxu0 }
 0x354   : > { %2079 = vst.msk [vmem:[%s217_s20 + $0x8] sm:$0xff] %vm250_vm0, %v2478_v47  ;;  %v2067_v1 = vpop.f32.mrb[3].mxu0 }
 0x355   : > { %2078 = vst.msk [vmem:[%s217_s20] sm:$0xff] %vm250_vm0, %v2067_v1 }
 0x356   : > { %2759 = shalt.err (!%p2756_p1)
}
 0x357   : > { %s2760_s17 = scalar_lea.hbm %s3341_s28, 256  ;;  %s2764_s30 = scalar_lea.hbm %s3390_s3, 512 }
 0x358   : > { %p2761_p13 = scmp.ne.s32.totalorder %s3341_s28, %s2760_s17  ;;  %p2765_p4 = scmp.lt.u32.totalorder %s3341_s28, %s3390_s3 }
 0x359   : > { %p2766_p5 = scmp.lt.u32.totalorder %s2764_s30, %s2760_s17  ;;  %p2768_p11 = scmp.lt.u32.totalorder %s2760_s17, %s3341_s28 }
 0x35a   : > { %p2762_p6 = pnand %p2761_p13, %p3404_p0 }
 0x35b   : > { %p2767_p8 = por %p2766_p5, %p2765_p4 }
 0x35c   : > { %p2763_p10 = pneg %p2762_p6 }
 0x35d   : > { %p2769_p2 = por %p2768_p11, %p2767_p8 }
 0x35f   : > { %p2770_p3 = pnand %p2769_p2, %p2763_p10 }
 0x361   : > { %2773 = shalt.err (!%p2770_p3)
}
 0x362   : > { %s2824_s18 = smov 128   ;;  %s2825_s20 = smov 8  }
 0x363   : > { %2599 = dma.vmem_to_hbm [thread:$0]  (%p3404_p0), %s3336_s7, 256, %s3341_s28, %s2081_s22, %s2824_s18, %s2824_s18, %s2825_s20  }
 0x364 PF: > { %s2109_s8 = sand.u32 1, %s2804_s12   ;;  %p3405_p7 = scmp.ne.s32.totalorder %s3395_s19, 0 }
 0x365   : > { %p3406_p9 = scmp.ge.s32.totalorder %s2816_s15, 2  ;;  %s2110_s24 = scalar_lea.sflag [#allocation4], %s2109_s8 }
 0x367   : > { %p2613_p12 = pnand %p3406_p9, %p3405_p7 }
 0x369   : > { %2799 = dma.done.wait (!%p2613_p12), %s2110_s24, 256  }
 0x36a   : > { %2801 = vsyncadd (!%p2613_p12), %s2110_s24, 4294967040  ;;  %p17_p1 = scmp.ge.s32.totalorder %s2962_s23, 4   ;;  %s3407_s12 = smov %s2808_s13 }
 0x36b   : > { %s3408_s13 = smov %s2812_s14  ;;  %s3409_s14 = smov %s2978_s9 }
 0x36c   : > { %s3410_s15 = smov %s2962_s23  ;;  %19 = sbr.rel (!%p17_p1) target bundleno = 6 (0x6), region = 104 }
 0x373   :  { %2115 = vsyncpa [#allocation3], 1 }
 0x374   :  { %2117 = vsyncpa [#allocation3 + $0x1], 1 }
 0x375   :  { %2118 = vsyncpa [#allocation6], 1 }
 0x376   :  { %2119 = vsyncpa [#allocation4], 1 }
 0x377   :  { %2121 = vsyncpa [#allocation4 + $0x1], 1 }

</bundles_post_ra>
